<compile_context>
chip_gen: v7x
topology: tpu7x:2x2x1
jax: 0.10.0
libtpu: 0.0.40
codegen_flags: <defaults>
</compile_context>

<pallas_src>
import functools

import jax
import jax.numpy as jnp
from jax import lax
from jax.experimental import pallas as pl
from jax.experimental.pallas import tpu as pltpu


def _instance_norm_kernel(x_ref, w_ref, b_ref, o_ref, *, eps):
    # x_ref/o_ref: (TILE_R, HW) lane-dense VMEM tiles; w_ref/b_ref: (TILE_R, 1).
    x = x_ref[...].astype(jnp.float32)                       # f32 accumulation
    mean = jnp.mean(x, axis=-1, keepdims=True)               # per-row mean
    xm = x - mean                                            # reused below
    var = jnp.mean(xm * xm, axis=-1, keepdims=True)          # biased (unbiased=False)
    inv = lax.rsqrt(var + eps)                               # EUP slot (free under mem-bound)
    y = xm * (inv * w_ref[...]) + b_ref[...]                 # vectorized affine
    o_ref[...] = y.astype(o_ref.dtype)                       # keep I/O dtype (bf16 stays bf16)


def _pick_row_tile(rows, hw, itemsize, target_tile_bytes=4 * 1024 * 1024):
    """Largest row tile whose (TILE_R, HW) slab fits the per-buffer VMEM budget.

    ~4 MiB per input tile -> with default double-buffering of input + output
    the footprint is ~16 MiB, which fits the scoped VMEM limit on v5e / v6e /
    v7x (we also raise vmem_limit_bytes to 32 MiB below for headroom).
    """
    max_rows = max(1, target_tile_bytes // max(1, hw * itemsize))
    if max_rows >= rows:
        # Whole problem fits in one tile; split in two for v7x's 2 TensorCores
        # when the half-tile still satisfies the sublane (multiple-of-8) rule.
        if rows >= 16 and (rows // 2) % 8 == 0:
            return rows // 2
        return rows
    # Round down to a multiple of 8 (sublane constraint); a non-dividing
    # boundary block is handled by Pallas padding/masking.
    return max(8, (max_rows // 8) * 8)


def instance_norm_2d(x, weight, bias, eps=1e-5):
    """x: (N, C, H, W); weight/bias: (1, C, 1, 1) as in the PyTorch module."""
    N, C, H, W = x.shape
    rows, hw = N * C, H * W

    # TODO(synk): for very large H*W where a single (n, c) slab no longer fits
    # the VMEM budget, switch to a two-phase sum / sum-of-squares reduction
    # over spatial tiles ('arbitrary' reduction axis + pl.when init/finalize).

    x2d = x.reshape(rows, hw)

    # Pre-broadcast per-channel affine params to one (rows, 1) f32 column so
    # the kernel applies them with a broadcasted multiply/add (no scalar-path
    # per-element SMEM reads).  Extra HBM traffic is N*C*8 bytes: negligible.
    w_col = (jnp.broadcast_to(weight.reshape(1, C), (N, C))
             .reshape(rows, 1).astype(jnp.float32))
    b_col = (jnp.broadcast_to(bias.reshape(1, C), (N, C))
             .reshape(rows, 1).astype(jnp.float32))

    tile_r = _pick_row_tile(rows, hw, jnp.dtype(x.dtype).itemsize)
    grid_r = pl.cdiv(rows, tile_r)

    kernel = functools.partial(_instance_norm_kernel, eps=float(eps))

    out2d = pl.pallas_call(
        kernel,
        out_shape=jax.ShapeDtypeStruct((rows, hw), x.dtype),
        grid=(grid_r,),
        in_specs=[
            pl.BlockSpec((tile_r, hw), lambda r: (r, 0)),   # activations
            pl.BlockSpec((tile_r, 1), lambda r: (r, 0)),    # weight column
            pl.BlockSpec((tile_r, 1), lambda r: (r, 0)),    # bias column
        ],
        out_specs=pl.BlockSpec((tile_r, hw), lambda r: (r, 0)),
        compiler_params=pltpu.CompilerParams(
            dimension_semantics=("parallel",),
            vmem_limit_bytes=32 * 1024 * 1024,
        ),
    )(x2d, w_col, b_col)

    return out2d.reshape(N, C, H, W)


if __name__ == "__main__":
    key = jax.random.PRNGKey(0)
    N, C, H, W = 2, 4, 16, 16

    x = jax.random.normal(key, (N, C, H, W), dtype=jnp.float32)

    # Deterministic parameter init matching nn.Parameter(torch.ones / torch.zeros).
    weight = jnp.ones((1, C, 1, 1), dtype=jnp.float32)
    bias = jnp.zeros((1, C, 1, 1), dtype=jnp.float32)

    out = instance_norm_2d(x, weight, bias, eps=1e-5)
    out = jax.block_until_ready(out)

    # Pure-JAX reference check (matches PyTorch InstanceNorm2d forward).
    mean = jnp.mean(x, axis=(2, 3), keepdims=True)
    var = jnp.mean((x - mean) ** 2, axis=(2, 3), keepdims=True)
    ref = weight * ((x - mean) / jnp.sqrt(var + 1e-5)) + bias
    assert jnp.allclose(out, ref, atol=1e-5, rtol=1e-5), "mismatch vs reference"

    print("KERNEL_OK")
</pallas_src>

<mosaic_0001>
module attributes {stable_mosaic.version = 11 : i64} {
  func.func @_instance_norm_kernel(%arg0: i32, %arg1: memref<8x256xf32, #tpu.memory_space<vmem>>, %arg2: memref<8x1xf32, #tpu.memory_space<vmem>>, %arg3: memref<8x1xf32, #tpu.memory_space<vmem>>, %arg4: memref<8x256xf32, #tpu.memory_space<vmem>>) attributes {dimension_semantics = [#tpu.dimension_semantics<parallel>], iteration_bounds = array<i64: 1>, scalar_prefetch = 0 : i64, scratch_operands = 0 : i64, tpu.core_type = #tpu.core_type<tc>, window_params = [{transform_indices = @transform_0, window_bounds = array<i64: 8, 256>}, {transform_indices = @transform_1, window_bounds = array<i64: 8, 1>}, {transform_indices = @transform_2, window_bounds = array<i64: 8, 1>}, {transform_indices = @transform_3, window_bounds = array<i64: 8, 256>}]} {
    %c0 = arith.constant 0 : index
    %c0_0 = arith.constant 0 : index
    %0 = vector.load %arg1[%c0, %c0_0] : memref<8x256xf32, #tpu.memory_space<vmem>>, vector<8x256xf32>
    %cst = arith.constant dense<0.000000e+00> : vector<8xf32>
    %1 = vector.multi_reduction <add>, %0, %cst [1] : vector<8x256xf32> to vector<8xf32>
    %2 = vector.shape_cast %1 : vector<8xf32> to vector<8x1xf32>
    %cst_1 = arith.constant 2.560000e+02 : f32
    %3 = vector.broadcast %cst_1 : f32 to vector<8x1xf32>
    %4 = arith.divf %2, %3 : vector<8x1xf32>
    %5 = vector.broadcast %4 : vector<8x1xf32> to vector<8x256xf32>
    %6 = arith.subf %0, %5 : vector<8x256xf32>
    %7 = arith.mulf %6, %6 : vector<8x256xf32>
    %cst_2 = arith.constant dense<0.000000e+00> : vector<8xf32>
    %8 = vector.multi_reduction <add>, %7, %cst_2 [1] : vector<8x256xf32> to vector<8xf32>
    %9 = vector.shape_cast %8 : vector<8xf32> to vector<8x1xf32>
    %cst_3 = arith.constant 2.560000e+02 : f32
    %10 = vector.broadcast %cst_3 : f32 to vector<8x1xf32>
    %11 = arith.divf %9, %10 : vector<8x1xf32>
    %cst_4 = arith.constant 9.99999974E-6 : f32
    %12 = vector.broadcast %cst_4 : f32 to vector<8x1xf32>
    %13 = arith.addf %11, %12 : vector<8x1xf32>
    %14 = math.rsqrt %13 : vector<8x1xf32>
    %c0_5 = arith.constant 0 : index
    %c0_6 = arith.constant 0 : index
    %15 = vector.load %arg2[%c0_5, %c0_6] : memref<8x1xf32, #tpu.memory_space<vmem>>, vector<8x1xf32>
    %16 = arith.mulf %14, %15 : vector<8x1xf32>
    %17 = vector.broadcast %16 : vector<8x1xf32> to vector<8x256xf32>
    %18 = arith.mulf %6, %17 : vector<8x256xf32>
    %c0_7 = arith.constant 0 : index
    %c0_8 = arith.constant 0 : index
    %19 = vector.load %arg3[%c0_7, %c0_8] : memref<8x1xf32, #tpu.memory_space<vmem>>, vector<8x1xf32>
    %20 = vector.broadcast %19 : vector<8x1xf32> to vector<8x256xf32>
    %21 = arith.addf %18, %20 : vector<8x256xf32>
    %c0_9 = arith.constant 0 : index
    %c0_10 = arith.constant 0 : index
    %22 = vector.load %arg4[%c0_9, %c0_10] : memref<8x256xf32, #tpu.memory_space<vmem>>, vector<8x256xf32>
    tpu.vector_store %arg4[%c0_9, %c0_10], %21 {strides = array<i32>} : memref<8x256xf32, #tpu.memory_space<vmem>>, vector<8x256xf32>,
    return
  }
  func.func @transform_0(%arg0: i32) -> (i32, i32) {
    %c0_i32 = arith.constant 0 : i32
    %c0_i32_0 = arith.constant 0 : i32
    return %arg0, %c0_i32 : i32, i32
  }
  func.func @transform_1(%arg0: i32) -> (i32, i32) {
    %c0_i32 = arith.constant 0 : i32
    %c0_i32_0 = arith.constant 0 : i32
    return %arg0, %c0_i32 : i32, i32
  }
  func.func @transform_2(%arg0: i32) -> (i32, i32) {
    %c0_i32 = arith.constant 0 : i32
    %c0_i32_0 = arith.constant 0 : i32
    return %arg0, %c0_i32 : i32, i32
  }
  func.func @transform_3(%arg0: i32) -> (i32, i32) {
    %c0_i32 = arith.constant 0 : i32
    %c0_i32_0 = arith.constant 0 : i32
    return %arg0, %c0_i32 : i32, i32
  }
}

</mosaic_0001>

<bundles_post_ra>
// kernel: tpu_custom_call.1
= control target key start
LH: loop header
LB: loop body
LE: loop exit
PB: predicated region body
PF: predicated region fallthrough
CT: control target
= control target key end

     0   :  { %s141_s0 = inlined_call_operand.vmem [shape: f32[8,256], index: 0, kind: input, shape index: {}]   ;;  %s142_s1 = inlined_call_operand.vmem [shape: f32[8,1], index: 1, kind: input, shape index: {}]   ;;  %s143_s2 = inlined_call_operand.vmem [shape: f32[8,1], index: 2, kind: input, shape index: {}]   ;;  %s144_s3 = inlined_call_operand.hbm [shape: f32[8,256], index: 3, kind: output, shape index: {}]  }
   0x1   :  { %v15_v0 = vld [vmem:[%s141_s0] sm:$0xff]  ;;  %v16_v1 = vld [vmem:[%s141_s0 + $0x8] sm:$0xff] }
   0x2   :  { %8 = vsyncpa [#allocation3], 0  ;;  %v17_v2 = vadd.f32 %v16_v1, %v15_v0  ;;  %v95_v10 = vmov 0   ;;  %v32_v14 = vld [vmem:[%s142_s1] sm:$0xff]  ;;  %s96_s19 = smov [#allocation2]  }
   0x3   :  { %67 = vset.pattern.permute.xlu1 %v95_v10  ;;  %68 = vset.pattern.permute.xlu0 %v95_v10  ;;  %v41_v17 = vld [vmem:[%s143_s2] sm:$0xff]  ;;  %s57_s20 = sshll.u32 %s96_s19, 4  ;;  %s58_s20 = int_to_ptr.vmem [resolvable:$true] %s57_s20 }
   0x4   :  { %18 = vadd.xlane.f32.xlu0 %v17_v2  ;;  %s71_s1 = scalar_lea.vmem %s58_s20, 256  ;;  %p76_p1 = scmp.lt.s32.totalorder %s58_s20, %s58_s20 }
   0x5   :  { %p72_p0 = scmp.ne.s32.totalorder %s58_s20, %s71_s1  ;;  %p77_p2 = scmp.lt.s32.totalorder %s71_s1, %s71_s1 }
   0x7   :  { %p78_p3 = por %p77_p2, %p76_p1 }
   0x9   :  { %p79_p4 = pnand %p78_p3, %p72_p0 }
  0x91   :  { %v19_v3 = vpop.xlane.xlu0 %18 }
  0x92   :  { %v21_v4 = vmul.f32 0.00390625, %v19_v3 }
  0x94   :  { %v22_v5 = vsub.f32 %v15_v0, %v21_v4  ;;  %v23_v6 = vsub.f32 %v16_v1, %v21_v4 }
  0x96   :  { %v24_v7 = vmul.f32 %v22_v5, %v22_v5  ;;  %v25_v8 = vmul.f32 %v23_v6, %v23_v6 }
  0x98   :  { %v26_v9 = vadd.f32 %v25_v8, %v24_v7 }
  0x9a   :  { %27 = vadd.xlane.f32.xlu0 %v26_v9 }
 0x127   :  { %v28_v11 = vpop.xlane.xlu0 %27 }
 0x128   :  { %v29_v12 = vmul.f32 0.00390625, %v28_v11 }
 0x12a   :  { %v30_v13 = vadd.f32 1e-05, %v29_v12 }
 0x12c   :  { %69 = vrsqrt.f32 %v30_v13 }
 0x136   :  { %v70_v15 = vpop.eup %69 }
 0x137   :  { %v33_v16 = vmul.f32 %v70_v15, %v32_v14 }
 0x139   :  { %36 = vperm.xlu1 %67, %v33_v16  }
 0x13d   :  { %44 = vperm.xlu1 %67, %v41_v17  }
 0x1b8   :  { %v37_v18 = vpop.permute.xlu1 %36 }
 0x1b9   :  { %v39_v19 = vmul.f32 %v37_v18, %v22_v5  ;;  %v40_v20 = vmul.f32 %v37_v18, %v23_v6 }
 0x1bc   :  { %v45_v21 = vpop.permute.xlu1 %44 }
 0x1bd   :  { %v47_v22 = vadd.f32 %v45_v21, %v39_v19  ;;  %v48_v23 = vadd.f32 %v45_v21, %v40_v20 }
 0x1bf   :  { %49 = vst [vmem:[#allocation2] sm:$0xff] %v47_v22  ;;  %50 = vst [vmem:[#allocation2 + $0x8] sm:$0xff] %v48_v23 }
 0x1c0   :  { %82 = shalt.err (!%p79_p4)
}
 0x1c1   :  { %s83_s22 = scalar_lea.hbm %s144_s3, 256 }
 0x1c2   :  { %p84_p5 = scmp.ne.s32.totalorder %s144_s3, %s83_s22  ;;  %p87_p6 = scmp.lt.u32.totalorder %s83_s22, %s144_s3 }
 0x1c4   :  { %p89_p7 = pnand %p87_p6, %p84_p5 }
 0x1c6   :  { %92 = shalt.err (!%p89_p7)
}
 0x1c7   :  { %60 = dma.vmem_to_hbm [thread:$0]  %s58_s20, 256, %s144_s3, [#allocation3]  }
 0x1c8   :  { %93 = dma.done.wait [#allocation3], 256  }
 0x1c9   :  { %94 = vsyncadd [#allocation3], 4294967040 }
 0x1ca   :  { %64 = vsyncpa [#allocation3], 1 }

</bundles_post_ra>
